<compile_context>
chip_gen: v7x
topology: tpu7x:2x2x1
jax: 0.10.0
libtpu: 0.0.40
codegen_flags: <defaults>
</compile_context>

<pallas_src>
import functools

import jax
import jax.numpy as jnp
from jax.experimental import pallas as pl
from jax.experimental.pallas import tpu as pltpu


def _round_up(x, m):
    return ((x + m - 1) // m) * m


def _int_pow(x, n):
    """x**n for small positive integer n via repeated multiply (VPU, not EUP)."""
    acc = x
    for _ in range(n - 1):
        acc = acc * x
    return acc


def _pick_spatial_tile(s_total, cap=2048):
    """Largest multiple-of-16 divisor of s_total that is <= cap (else s_total)."""
    if s_total <= cap:
        return s_total
    t = (cap // 16) * 16
    while t >= 16:
        if s_total % t == 0:
            return t
        t -= 16
    return s_total


# ----------------------------------------------------------------------------
# Fused kernel: grid = (batch_blocks, spatial_blocks); spatial axis innermost.
# ----------------------------------------------------------------------------
def _fused_retrieval_kernel(patch_ref, cw_ref, cb_ref, lw_ref, lb_ref,
                            ww_ref, wb_ref, sel_ref, o_ref, acc_ref, *,
                            n_pix, p, eps_gem, eps_l2):
    """
    patch_ref: (B_blk, tile_s, K_pad) bf16   im2col patches for this block
    cw_ref   : (K_pad, C_feat_pad)    bf16   conv weight (im2col layout)
    cb_ref   : (1, C_feat_pad)        f32    conv bias
    lw_ref   : (C_feat_pad, D_lw_pad) bf16   lwhiten weight (pre-transposed)
    lb_ref   : (1, D_lw_pad)          f32    lwhiten bias
    ww_ref   : (D_lw_pad, D_out_pad)  f32    whiten weight (pre-transposed)
    wb_ref   : (1, D_out_pad)         f32    whiten bias
    sel_ref  : (B_blk, B_blk*tile_s)  bf16   block-diag ones (per-image GeM sum)
    o_ref    : (B_blk, D_out_pad)     f32    L2-normalised descriptors
    acc_ref  : (B_blk, D_lw_pad)      f32    GeM partial-sum accumulator (VMEM)
    """
    s = pl.program_id(1)
    b_blk, tile_s, k_pad = patch_ref.shape

    @pl.when(s == 0)
    def _():
        acc_ref[...] = jnp.zeros_like(acc_ref)

    # --- features: 3x3 conv (pad=1) as ONE im2col matmul; bf16 ops, f32 acc ---
    patches = patch_ref[...].reshape(b_blk * tile_s, k_pad)
    feat = jnp.dot(patches, cw_ref[...], preferred_element_type=jnp.float32)
    feat = jnp.maximum(feat + cb_ref[...], 0.0)                  # bias + ReLU

    # --- lwhiten: per-pixel Linear; bf16 operands, f32 acc ---
    feat = jnp.dot(feat.astype(jnp.bfloat16), lw_ref[...],
                   preferred_element_type=jnp.float32) + lb_ref[...]

    # --- GeM: clamp -> x^p (VPU multiplies) -> per-image partial sum via MXU ---
    v = jnp.maximum(feat, eps_gem)
    if float(p).is_integer() and p >= 1:
        vp = _int_pow(v, int(p))                                 # p=3 -> v*v*v
    else:
        vp = jnp.exp(jnp.log(v) * p)                             # generic fallback (EUP-heavy)
    acc_ref[...] += jnp.dot(sel_ref[...], vp.astype(jnp.bfloat16),
                            preferred_element_type=jnp.float32)

    # --- finalize on the last spatial block: ^(1/p), L2N, whiten, L2N, store ---
    @pl.when(s == pl.num_programs(1) - 1)
    def _():
        pooled = acc_ref[...] * (1.0 / n_pix)                    # mean of v^p
        pooled = jnp.exp(jnp.log(pooled) * (1.0 / p))            # tiny tensor -> EUP ok
        nrm = jnp.sqrt(jnp.sum(pooled * pooled, axis=1, keepdims=True))
        pooled = pooled / (nrm + eps_l2)
        out = jnp.dot(pooled, ww_ref[...],
                      preferred_element_type=jnp.float32) + wb_ref[...]
        nrm2 = jnp.sqrt(jnp.sum(out * out, axis=1, keepdims=True))
        o_ref[...] = (out / (nrm2 + eps_l2)).astype(o_ref.dtype)


# ----------------------------------------------------------------------------
# Parameter preparation (done ONCE): im2col layout, lane padding to 128, bf16.
# ----------------------------------------------------------------------------
def prepare_params(torch_params, lane_pad=128):
    conv_w = torch_params["conv_w"]                     # (C_feat, C_in, 3, 3)
    c_feat, c_in = conv_w.shape[0], conv_w.shape[1]
    d_lw = torch_params["lw_w"].shape[0]
    d_out = torch_params["wh_w"].shape[0]

    k = 9 * c_in
    k_pad = _round_up(k, 16)
    c_feat_p = _round_up(c_feat, lane_pad)
    d_lw_p = _round_up(d_lw, lane_pad)
    d_out_p = _round_up(d_out, lane_pad)

    def pad2(a, r, c):
        return jnp.pad(a, ((0, r - a.shape[0]), (0, c - a.shape[1])))

    cw = jnp.transpose(conv_w, (2, 3, 1, 0)).reshape(k, c_feat)   # (9*C_in, C_feat)
    return {
        "cw": pad2(cw, k_pad, c_feat_p).astype(jnp.bfloat16),
        "cb": pad2(torch_params["conv_b"].reshape(1, -1), 1, c_feat_p).astype(jnp.float32),
        "lw": pad2(torch_params["lw_w"].T, c_feat_p, d_lw_p).astype(jnp.bfloat16),
        "lb": pad2(torch_params["lw_b"].reshape(1, -1), 1, d_lw_p).astype(jnp.float32),
        "ww": pad2(torch_params["wh_w"].T, d_lw_p, d_out_p).astype(jnp.float32),
        "wb": pad2(torch_params["wh_b"].reshape(1, -1), 1, d_out_p).astype(jnp.float32),
    }


# ----------------------------------------------------------------------------
# Forward pass (single fused pallas_call)
# ----------------------------------------------------------------------------
def image_retrieval_net_forward(x_nchw, kparams, *, d_out, p=3.0,
                                eps_gem=1e-6, eps_l2=1e-6,
                                batch_block=8, spatial_tile=None,
                                vmem_limit_bytes=48 * 1024 * 1024):
    n, c_in, h, w = x_nchw.shape
    s_total = h * w
    cw, cb = kparams["cw"], kparams["cb"]
    lw, lb = kparams["lw"], kparams["lb"]
    ww, wb = kparams["ww"], kparams["wb"]
    k_pad, c_feat_p = cw.shape
    d_lw_p = lw.shape[1]
    d_out_p = ww.shape[1]
    k = 9 * c_in

    # --- wrapper-side im2col (C_in tiny): (N, H*W, 9*C_in) -> pad K -> bf16 ---
    xh = jnp.transpose(x_nchw, (0, 2, 3, 1)).astype(jnp.float32)   # NHWC
    xp = jnp.pad(xh, ((0, 0), (1, 1), (1, 1), (0, 0)))             # 3x3, pad=1
    taps = [xp[:, ki:ki + h, kj:kj + w, :] for ki in range(3) for kj in range(3)]
    patches = jnp.concatenate(taps, axis=-1).reshape(n, s_total, k)
    patches = jnp.pad(patches, ((0, 0), (0, 0), (0, k_pad - k))).astype(jnp.bfloat16)

    # --- batch blocking (amortize per-step overhead; bigger M for the MXU) ---
    b_blk = max(1, min(n, batch_block))
    n_pad = _round_up(n, b_blk)
    if n_pad != n:
        patches = jnp.pad(patches, ((0, n_pad - n), (0, 0), (0, 0)))

    # --- spatial tiling (reduction grid axis; caps per-step VMEM) ---
    tile_s = spatial_tile if spatial_tile is not None else _pick_spatial_tile(s_total)
    assert s_total % tile_s == 0, (s_total, tile_s)

    # block-diagonal ones: per-image GeM partial sum as one MXU matmul
    sel = jnp.repeat(jnp.eye(b_blk, dtype=jnp.float32), tile_s, axis=1)
    sel = sel.astype(jnp.bfloat16)                                  # (b_blk, b_blk*tile_s)

    kernel = functools.partial(_fused_retrieval_kernel, n_pix=s_total, p=p,
                               eps_gem=eps_gem, eps_l2=eps_l2)

    out = pl.pallas_call(
        kernel,
        out_shape=jax.ShapeDtypeStruct((n_pad, d_out_p), jnp.float32),
        grid_spec=pltpu.PrefetchScalarGridSpec(
            num_scalar_prefetch=0,
            grid=(n_pad // b_blk, s_total // tile_s),
            in_specs=[
                pl.BlockSpec((b_blk, tile_s, k_pad), lambda b, s: (b, s, 0)),
                pl.BlockSpec((k_pad, c_feat_p), lambda b, s: (0, 0)),
                pl.BlockSpec((1, c_feat_p), lambda b, s: (0, 0)),
                pl.BlockSpec((c_feat_p, d_lw_p), lambda b, s: (0, 0)),
                pl.BlockSpec((1, d_lw_p), lambda b, s: (0, 0)),
                pl.BlockSpec((d_lw_p, d_out_p), lambda b, s: (0, 0)),
                pl.BlockSpec((1, d_out_p), lambda b, s: (0, 0)),
                pl.BlockSpec((b_blk, b_blk * tile_s), lambda b, s: (0, 0)),
            ],
            out_specs=pl.BlockSpec((b_blk, d_out_p), lambda b, s: (b, 0)),
            scratch_shapes=[pltpu.VMEM((b_blk, d_lw_p), jnp.float32)],
        ),
        compiler_params=pltpu.CompilerParams(
            dimension_semantics=("parallel", "arbitrary"),
            vmem_limit_bytes=vmem_limit_bytes,
        ),
    )(patches, cw, cb, lw, lb, ww, wb, sel)

    # slice off lane/batch padding; final permute(1, 0) -> (outputdim, batch)
    return out[:n, :d_out].T


# ----------------------------------------------------------------------------
# Pure-JAX reference (correctness verification only)
# ----------------------------------------------------------------------------
def reference_forward(x_nchw, torch_params, p=3.0, eps=1e-6):
    hp = jax.lax.Precision.HIGHEST
    o = jax.lax.conv_general_dilated(
        x_nchw, torch_params["conv_w"], window_strides=(1, 1), padding="SAME",
        dimension_numbers=("NCHW", "OIHW", "NCHW"), precision=hp)
    o = jnp.maximum(o + torch_params["conv_b"][None, :, None, None], 0.0)
    n, c, h, w = o.shape
    o = jnp.transpose(o, (0, 2, 3, 1)).reshape(-1, c)
    o = jnp.dot(o, torch_params["lw_w"].T, precision=hp) + torch_params["lw_b"]
    d = o.shape[-1]
    o = jnp.transpose(o.reshape(n, h, w, d), (0, 3, 1, 2))          # (N, D, H, W)
    o = jnp.mean(jnp.maximum(o, eps) ** p, axis=(2, 3)) ** (1.0 / p)
    o = o / (jnp.linalg.norm(o, axis=1, keepdims=True) + eps)
    o = jnp.dot(o, torch_params["wh_w"].T, precision=hp) + torch_params["wh_b"]
    o = o / (jnp.linalg.norm(o, axis=1, keepdims=True) + eps)
    return o.T


# ----------------------------------------------------------------------------
# Main
# ----------------------------------------------------------------------------
if __name__ == "__main__":
    key = jax.random.PRNGKey(0)
    k_x, k_cw, k_cb, k_lw, k_lb, k_ww, k_wb = jax.random.split(key, 7)

    N, C_IN, H, W = 2, 3, 16, 16
    C_FEAT, D_LW, D_OUT = 32, 32, 16

    x = jax.random.normal(k_x, (N, C_IN, H, W), dtype=jnp.float32)

    torch_params = {
        "conv_w": 0.1 * jax.random.normal(k_cw, (C_FEAT, C_IN, 3, 3), jnp.float32),
        "conv_b": 0.1 * jax.random.normal(k_cb, (C_FEAT,), jnp.float32),
        "lw_w": 0.1 * jax.random.normal(k_lw, (D_LW, C_FEAT), jnp.float32),
        "lw_b": 0.1 * jax.random.normal(k_lb, (D_LW,), jnp.float32),
        "wh_w": 0.1 * jax.random.normal(k_ww, (D_OUT, D_LW), jnp.float32),
        "wh_b": 0.1 * jax.random.normal(k_wb, (D_OUT,), jnp.float32),
    }
    kparams = prepare_params(torch_params)            # one-time layout conversion

    # spatial_tile=128 splits the 256 pixels into 2 spatial grid steps so the
    # GeM partial-sum accumulator path is exercised even at demo shapes.
    fwd = jax.jit(functools.partial(image_retrieval_net_forward,
                                    d_out=D_OUT, spatial_tile=128))
    out = jax.block_until_ready(fwd(x, kparams))

    # shape / sanity checks
    assert out.shape == (D_OUT, N), out.shape
    assert bool(jnp.all(jnp.isfinite(out)))
    norms = jnp.sqrt(jnp.sum(out * out, axis=0))
    assert bool(jnp.all(jnp.abs(norms - 1.0) < 1e-3)), norms

    # numerical check vs plain-JAX f32 reference (bf16 matmul operands in-kernel)
    ref = jax.block_until_ready(jax.jit(reference_forward)(x, torch_params))
    max_err = float(jnp.max(jnp.abs(out - ref)))
    assert max_err < 3e-2, max_err

    print("KERNEL_OK")
</pallas_src>

<mosaic_0001>
module attributes {stable_mosaic.version = 11 : i64} {
  func.func @_fused_retrieval_kernel(%arg0: i32, %arg1: i32, %arg2: memref<2x128x32xbf16, #tpu.memory_space<vmem>>, %arg3: memref<32x128xbf16, #tpu.memory_space<vmem>>, %arg4: memref<1x128xf32, #tpu.memory_space<vmem>>, %arg5: memref<128x128xbf16, #tpu.memory_space<vmem>>, %arg6: memref<1x128xf32, #tpu.memory_space<vmem>>, %arg7: memref<128x128xf32, #tpu.memory_space<vmem>>, %arg8: memref<1x128xf32, #tpu.memory_space<vmem>>, %arg9: memref<2x256xbf16, #tpu.memory_space<vmem>>, %arg10: memref<2x128xf32, #tpu.memory_space<vmem>>, %arg11: memref<2x128xf32, #tpu.memory_space<vmem>>) attributes {dimension_semantics = [#tpu.dimension_semantics<parallel>, #tpu.dimension_semantics<arbitrary>], iteration_bounds = array<i64: 1, 2>, scalar_prefetch = 0 : i64, scratch_operands = 1 : i64, tpu.core_type = #tpu.core_type<tc>, window_params = [{transform_indices = @transform_0, window_bounds = array<i64: 2, 128, 32>}, {pipeline_mode = #tpu.pipeline_mode<synchronous>, transform_indices = @transform_1, window_bounds = array<i64: 32, 128>}, {pipeline_mode = #tpu.pipeline_mode<synchronous>, transform_indices = @transform_2, window_bounds = array<i64: 1, 128>}, {pipeline_mode = #tpu.pipeline_mode<synchronous>, transform_indices = @transform_3, window_bounds = array<i64: 128, 128>}, {pipeline_mode = #tpu.pipeline_mode<synchronous>, transform_indices = @transform_4, window_bounds = array<i64: 1, 128>}, {pipeline_mode = #tpu.pipeline_mode<synchronous>, transform_indices = @transform_5, window_bounds = array<i64: 128, 128>}, {pipeline_mode = #tpu.pipeline_mode<synchronous>, transform_indices = @transform_6, window_bounds = array<i64: 1, 128>}, {pipeline_mode = #tpu.pipeline_mode<synchronous>, transform_indices = @transform_7, window_bounds = array<i64: 2, 256>}, {transform_indices = @transform_8, window_bounds = array<i64: 2, 128>}]} {
    %c0_i32 = arith.constant 0 : i32
    %0 = arith.cmpi eq, %arg1, %c0_i32 : i32
    %1 = arith.extui %0 : i1 to i32
    %c0_i32_0 = arith.constant 0 : i32
    %2 = arith.cmpi ne, %1, %c0_i32_0 : i32
    scf.if %2 {
      %cst_22 = arith.constant 0.000000e+00 : f32
      %31 = vector.broadcast %cst_22 : f32 to vector<2x128xf32>
      %c0_23 = arith.constant 0 : index
      %c0_24 = arith.constant 0 : index
      %32 = vector.load %arg11[%c0_23, %c0_24] : memref<2x128xf32, #tpu.memory_space<vmem>>, vector<2x128xf32>
      tpu.vector_store %arg11[%c0_23, %c0_24], %31 {strides = array<i32>} : memref<2x128xf32, #tpu.memory_space<vmem>>, vector<2x128xf32>,
    } else {
    }
    %c0 = arith.constant 0 : index
    %c0_1 = arith.constant 0 : index
    %c0_2 = arith.constant 0 : index
    %3 = vector.load %arg2[%c0, %c0_1, %c0_2] : memref<2x128x32xbf16, #tpu.memory_space<vmem>>, vector<2x128x32xbf16>
    %4 = vector.shape_cast %3 : vector<2x128x32xbf16> to vector<256x32xbf16>
    %c0_3 = arith.constant 0 : index
    %c0_4 = arith.constant 0 : index
    %5 = vector.load %arg3[%c0_3, %c0_4] : memref<32x128xbf16, #tpu.memory_space<vmem>>, vector<32x128xbf16>
    %cst = arith.constant dense<0.000000e+00> : vector<256x128xf32>
    %6 = tpu.matmul %4, %5, %cst {dimension_numbers = #tpu.dot_dimension_numbers<[1], [0], [0], [1], [0, 0, 1, 1], [], []>} : vector<256x32xbf16>, vector<32x128xbf16>, vector<256x128xf32> -> vector<256x128xf32>
    %c0_5 = arith.constant 0 : index
    %c0_6 = arith.constant 0 : index
    %7 = vector.load %arg4[%c0_5, %c0_6] : memref<1x128xf32, #tpu.memory_space<vmem>>, vector<1x128xf32>
    %8 = vector.broadcast %7 : vector<1x128xf32> to vector<256x128xf32>
    %9 = arith.addf %6, %8 : vector<256x128xf32>
    %cst_7 = arith.constant 0.000000e+00 : f32
    %10 = vector.broadcast %cst_7 : f32 to vector<256x128xf32>
    %11 = arith.maximumf %9, %10 : vector<256x128xf32>
    %12 = arith.truncf %11 : vector<256x128xf32> to vector<256x128xbf16>
    %c0_8 = arith.constant 0 : index
    %c0_9 = arith.constant 0 : index
    %13 = vector.load %arg5[%c0_8, %c0_9] : memref<128x128xbf16, #tpu.memory_space<vmem>>, vector<128x128xbf16>
    %cst_10 = arith.constant dense<0.000000e+00> : vector<256x128xf32>
    %14 = tpu.matmul %12, %13, %cst_10 {dimension_numbers = #tpu.dot_dimension_numbers<[1], [0], [0], [1], [0, 0, 1, 1], [], []>} : vector<256x128xbf16>, vector<128x128xbf16>, vector<256x128xf32> -> vector<256x128xf32>
    %c0_11 = arith.constant 0 : index
    %c0_12 = arith.constant 0 : index
    %15 = vector.load %arg6[%c0_11, %c0_12] : memref<1x128xf32, #tpu.memory_space<vmem>>, vector<1x128xf32>
    %16 = vector.broadcast %15 : vector<1x128xf32> to vector<256x128xf32>
    %17 = arith.addf %14, %16 : vector<256x128xf32>
    %cst_13 = arith.constant 9.99999997E-7 : f32
    %18 = vector.broadcast %cst_13 : f32 to vector<256x128xf32>
    %19 = arith.maximumf %17, %18 : vector<256x128xf32>
    %20 = arith.mulf %19, %19 : vector<256x128xf32>
    %21 = arith.mulf %20, %19 : vector<256x128xf32>
    %c0_14 = arith.constant 0 : index
    %c0_15 = arith.constant 0 : index
    %22 = vector.load %arg11[%c0_14, %c0_15] : memref<2x128xf32, #tpu.memory_space<vmem>>, vector<2x128xf32>
    %c0_16 = arith.constant 0 : index
    %c0_17 = arith.constant 0 : index
    %23 = vector.load %arg9[%c0_16, %c0_17] : memref<2x256xbf16, #tpu.memory_space<vmem>>, vector<2x256xbf16>
    %24 = arith.truncf %21 : vector<256x128xf32> to vector<256x128xbf16>
    %cst_18 = arith.constant dense<0.000000e+00> : vector<2x128xf32>
    %25 = tpu.matmul %23, %24, %cst_18 {dimension_numbers = #tpu.dot_dimension_numbers<[1], [0], [0], [1], [0, 0, 1, 1], [], []>} : vector<2x256xbf16>, vector<256x128xbf16>, vector<2x128xf32> -> vector<2x128xf32>
    %26 = arith.addf %22, %25 : vector<2x128xf32>
    %c0_19 = arith.constant 0 : index
    %c0_20 = arith.constant 0 : index
    %27 = vector.load %arg11[%c0_19, %c0_20] : memref<2x128xf32, #tpu.memory_space<vmem>>, vector<2x128xf32>
    tpu.vector_store %arg11[%c0_19, %c0_20], %26 {strides = array<i32>} : memref<2x128xf32, #tpu.memory_space<vmem>>, vector<2x128xf32>,
    %c1_i32 = arith.constant 1 : i32
    %28 = arith.cmpi eq, %arg1, %c1_i32 : i32
    %29 = arith.extui %28 : i1 to i32
    %c0_i32_21 = arith.constant 0 : i32
    %30 = arith.cmpi ne, %29, %c0_i32_21 : i32
    scf.if %30 {
      %c0_22 = arith.constant 0 : index
      %c0_23 = arith.constant 0 : index
      %31 = vector.load %arg11[%c0_22, %c0_23] : memref<2x128xf32, #tpu.memory_space<vmem>>, vector<2x128xf32>
      %cst_24 = arith.constant 3.906250e-03 : f32
      %32 = vector.broadcast %cst_24 : f32 to vector<2x128xf32>
      %33 = arith.mulf %31, %32 : vector<2x128xf32>
      %34 = math.log %33 : vector<2x128xf32>
      %cst_25 = arith.constant 0.333333343 : f32
      %35 = vector.broadcast %cst_25 : f32 to vector<2x128xf32>
      %36 = arith.mulf %34, %35 : vector<2x128xf32>
      %37 = math.exp %36 : vector<2x128xf32>
      %38 = arith.mulf %37, %37 : vector<2x128xf32>
      %cst_26 = arith.constant dense<0.000000e+00> : vector<2xf32>
      %39 = vector.multi_reduction <add>, %38, %cst_26 [1] : vector<2x128xf32> to vector<2xf32>
      %40 = vector.shape_cast %39 : vector<2xf32> to vector<2x1xf32>
      %41 = math.sqrt %40 : vector<2x1xf32>
      %cst_27 = arith.constant 9.99999997E-7 : f32
      %42 = vector.broadcast %cst_27 : f32 to vector<2x1xf32>
      %43 = arith.addf %41, %42 : vector<2x1xf32>
      %44 = vector.broadcast %43 : vector<2x1xf32> to vector<2x128xf32>
      %45 = arith.divf %37, %44 : vector<2x128xf32>
      %c0_28 = arith.constant 0 : index
      %c0_29 = arith.constant 0 : index
      %46 = vector.load %arg7[%c0_28, %c0_29] : memref<128x128xf32, #tpu.memory_space<vmem>>, vector<128x128xf32>
      %cst_30 = arith.constant dense<0.000000e+00> : vector<2x128xf32>
      %47 = tpu.matmul %45, %46, %cst_30 {dimension_numbers = #tpu.dot_dimension_numbers<[1], [0], [0], [1], [0, 0, 1, 1], [], []>} : vector<2x128xf32>, vector<128x128xf32>, vector<2x128xf32> -> vector<2x128xf32>
      %c0_31 = arith.constant 0 : index
      %c0_32 = arith.constant 0 : index
      %48 = vector.load %arg8[%c0_31, %c0_32] : memref<1x128xf32, #tpu.memory_space<vmem>>, vector<1x128xf32>
      %49 = vector.broadcast %48 : vector<1x128xf32> to vector<2x128xf32>
      %50 = arith.addf %47, %49 : vector<2x128xf32>
      %51 = arith.mulf %50, %50 : vector<2x128xf32>
      %cst_33 = arith.constant dense<0.000000e+00> : vector<2xf32>
      %52 = vector.multi_reduction <add>, %51, %cst_33 [1] : vector<2x128xf32> to vector<2xf32>
      %53 = vector.shape_cast %52 : vector<2xf32> to vector<2x1xf32>
      %54 = math.sqrt %53 : vector<2x1xf32>
      %cst_34 = arith.constant 9.99999997E-7 : f32
      %55 = vector.broadcast %cst_34 : f32 to vector<2x1xf32>
      %56 = arith.addf %54, %55 : vector<2x1xf32>
      %57 = vector.broadcast %56 : vector<2x1xf32> to vector<2x128xf32>
      %58 = arith.divf %50, %57 : vector<2x128xf32>
      %c0_35 = arith.constant 0 : index
      %c0_36 = arith.constant 0 : index
      %59 = vector.load %arg10[%c0_35, %c0_36] : memref<2x128xf32, #tpu.memory_space<vmem>>, vector<2x128xf32>
      tpu.vector_store %arg10[%c0_35, %c0_36], %58 {strides = array<i32>} : memref<2x128xf32, #tpu.memory_space<vmem>>, vector<2x128xf32>,
    } else {
    }
    return
  }
  func.func @transform_0(%arg0: i32, %arg1: i32) -> (i32, i32, i32) {
    %c0_i32 = arith.constant 0 : i32
    %c0_i32_0 = arith.constant 0 : i32
    return %arg0, %arg1, %c0_i32 : i32, i32, i32
  }
  func.func @transform_1(%arg0: i32, %arg1: i32) -> (i32, i32) {
    %c0_i32 = arith.constant 0 : i32
    %c0_i32_0 = arith.constant 0 : i32
    %c0_i32_1 = arith.constant 0 : i32
    return %c0_i32, %c0_i32_0 : i32, i32
  }
  func.func @transform_2(%arg0: i32, %arg1: i32) -> (i32, i32) {
    %c0_i32 = arith.constant 0 : i32
    %c0_i32_0 = arith.constant 0 : i32
    %c0_i32_1 = arith.constant 0 : i32
    return %c0_i32, %c0_i32_0 : i32, i32
  }
  func.func @transform_3(%arg0: i32, %arg1: i32) -> (i32, i32) {
    %c0_i32 = arith.constant 0 : i32
    %c0_i32_0 = arith.constant 0 : i32
    %c0_i32_1 = arith.constant 0 : i32
    return %c0_i32, %c0_i32_0 : i32, i32
  }
  func.func @transform_4(%arg0: i32, %arg1: i32) -> (i32, i32) {
    %c0_i32 = arith.constant 0 : i32
    %c0_i32_0 = arith.constant 0 : i32
    %c0_i32_1 = arith.constant 0 : i32
    return %c0_i32, %c0_i32_0 : i32, i32
  }
  func.func @transform_5(%arg0: i32, %arg1: i32) -> (i32, i32) {
    %c0_i32 = arith.constant 0 : i32
    %c0_i32_0 = arith.constant 0 : i32
    %c0_i32_1 = arith.constant 0 : i32
    return %c0_i32, %c0_i32_0 : i32, i32
  }
  func.func @transform_6(%arg0: i32, %arg1: i32) -> (i32, i32) {
    %c0_i32 = arith.constant 0 : i32
    %c0_i32_0 = arith.constant 0 : i32
    %c0_i32_1 = arith.constant 0 : i32
    return %c0_i32, %c0_i32_0 : i32, i32
  }
  func.func @transform_7(%arg0: i32, %arg1: i32) -> (i32, i32) {
    %c0_i32 = arith.constant 0 : i32
    %c0_i32_0 = arith.constant 0 : i32
    %c0_i32_1 = arith.constant 0 : i32
    return %c0_i32, %c0_i32_0 : i32, i32
  }
  func.func @transform_8(%arg0: i32, %arg1: i32) -> (i32, i32) {
    %c0_i32 = arith.constant 0 : i32
    %c0_i32_0 = arith.constant 0 : i32
    return %arg0, %c0_i32 : i32, i32
  }
}

</mosaic_0001>

<bundles_post_ra>
// kernel: image_retrieval_net_forward.1
= control target key start
LH: loop header
LB: loop body
LE: loop exit
PB: predicated region body
PF: predicated region fallthrough
CT: control target
= control target key end

     0   :  { %s1960_s27 = smov 0   ;;  %s1962_s28 = smov 0   ;;  %s2322_s0 = inlined_call_operand.vmem [shape: bf16[2,256,32], index: 0, kind: input, shape index: {}]   ;;  %s2323_s1 = inlined_call_operand.vmem [shape: bf16[32,128], index: 1, kind: input, shape index: {}]   ;;  %s2324_s2 = inlined_call_operand.vmem [shape: f32[1,128], index: 2, kind: input, shape index: {}]   ;;  %s2325_s3 = inlined_call_operand.vmem [shape: bf16[128,128], index: 3, kind: input, shape index: {}]   ;;  %s2326_s4 = inlined_call_operand.vmem [shape: f32[1,128], index: 4, kind: input, shape index: {}]   ;;  %s2327_s5 = inlined_call_operand.vmem [shape: f32[128,128], index: 5, kind: input, shape index: {}]   ;;  %s2328_s6 = inlined_call_operand.vmem [shape: f32[1,128], index: 6, kind: input, shape index: {}]   ;;  %s2329_s7 = inlined_call_operand.vmem [shape: bf16[2,256], index: 7, kind: input, shape index: {}]   ;;  %s2330_s8 = inlined_call_operand.vmem [shape: f32[2,128], index: 8, kind: output, shape index: {}]  }
   0x1   :  { %s1964_s29 = smov 0   ;;  %s1966_s30 = smov 0  }
   0x2   :  { %s1968_s9 = smov 0  }
   0x3 LB: > { %s27_s10 = sadd.s32 1, %s1904_s30  ;;  %p46_p1 = scmp.ne.s32.totalorder %s1896_s28, %s1892_s27  ;;  %s1908_s9 = sphi %s1968_s9, %s18_s9   ;;  %s1904_s30 = sphi %s1966_s30, %s2334_s30   ;;  %s1900_s29 = sphi %s1964_s29, %s2333_s29   ;;  %s1896_s28 = sphi %s1962_s28, %s2332_s28   ;;  %s1892_s27 = sphi %s1960_s27, %s2331_s27  }
   0x4   : > { %p28_p0 = scmp.ge.s32.totalorder %s27_s10, 2  ;;  %p47_p2 = scmp.eq.s32.totalorder %s1908_s9, 0 }
   0x5   : > { %s39_s12 = sadd.s32 1, %s1896_s28  ;;  %p1505_p5 = scmp.ge.s32.totalorder %s1908_s9, 2 }
   0x6   : > { %s2336_s10 = smov (%p28_p0, %s27_s10), 0  ;;  %p48_p3 = por %p47_p2, %p46_p1 }
   0x7   : > { %s35_s11 = ssub.s32 %s1904_s30, %s2336_s10  ;;  %266 = sbr.rel (%p1505_p5) target bundleno = 26 (0x1a), region = 44 }
   0x8   : > { %p37_p4 = scmp.eq.s32.totalorder %s35_s11, 0 }
   0xa   : > { %s1995_s13 = scalar_select %p37_p4, %s1896_s28, %s39_s12  }
   0xe   : > { %269 = sbr.rel (!%p48_p3) target bundleno = 26 (0x1a), region = 48  ;;  %s271_s14 = sand.u32 (%p48_p3), 1, %s1896_s28  }
   0xf   : > { %s1562_s15 = sshll.u32 (%p48_p3), %s1904_s30, 6  ;;  %s1506_s16 = sshll.u32 (%p48_p3), %s271_s14, 7 }
  0x10   : > { %s2003_s19 = scalar_lea.vmem (%p48_p3), %s2322_s0, %s1562_s15  ;;  %s273_s20 = scalar_lea.vmem (%p48_p3), [#allocation3], %s1506_s16 }
  0x11   : > { %v295_v0 = vld [vmem:[%s2003_s19] sm:$0xff] (%p48_p3)   ;;  %v299_v1 = vld [vmem:[%s2003_s19 + $0x8] sm:$0xff] (%p48_p3)   ;;  %v303_v2 = vld [vmem:[%s2003_s19 + $0x10] sm:$0xff] (%p48_p3)  }
  0x12   : > { %296 = vst [vmem:[%s273_s20] sm:$0xff] (%p48_p3), %v295_v0   ;;  %300 = vst [vmem:[%s273_s20 + $0x8] sm:$0xff] (%p48_p3), %v299_v1   ;;  %v307_v3 = vld [vmem:[%s2003_s19 + $0x18] sm:$0xff] (%p48_p3)   ;;  %v311_v4 = vld [vmem:[%s2003_s19 + $0x20] sm:$0xff] (%p48_p3)  }
  0x13   : > { %304 = vst [vmem:[%s273_s20 + $0x10] sm:$0xff] (%p48_p3), %v303_v2   ;;  %v315_v5 = vld [vmem:[%s2003_s19 + $0x28] sm:$0xff] (%p48_p3)   ;;  %308 = vst [vmem:[%s273_s20 + $0x18] sm:$0xff] (%p48_p3), %v307_v3   ;;  %v319_v6 = vld [vmem:[%s2003_s19 + $0x30] sm:$0xff] (%p48_p3)  }
  0x14   : > { %312 = vst [vmem:[%s273_s20 + $0x20] sm:$0xff] (%p48_p3), %v311_v4   ;;  %316 = vst [vmem:[%s273_s20 + $0x28] sm:$0xff] (%p48_p3), %v315_v5   ;;  %v323_v7 = vld [vmem:[%s2003_s19 + $0x38] sm:$0xff] (%p48_p3)   ;;  %v327_v8 = vld [vmem:[%s2003_s19 + $0x80] sm:$0xff] (%p48_p3)  }
  0x15   : > { %320 = vst [vmem:[%s273_s20 + $0x30] sm:$0xff] %v319_v6   ;;  %324 = vst [vmem:[%s273_s20 + $0x38] sm:$0xff] %v323_v7   ;;  %v331_v9 = vld [vmem:[%s2003_s19 + $0x88] sm:$0xff]   ;;  %v335_v10 = vld [vmem:[%s2003_s19 + $0x90] sm:$0xff]  }
  0x16   : > { %328 = vst [vmem:[%s273_s20 + $0x40] sm:$0xff] %v327_v8   ;;  %v339_v11 = vld [vmem:[%s2003_s19 + $0x98] sm:$0xff]   ;;  %332 = vst [vmem:[%s273_s20 + $0x48] sm:$0xff] %v331_v9   ;;  %v343_v12 = vld [vmem:[%s2003_s19 + $0xa0] sm:$0xff]  }
  0x17   : > { %336 = vst [vmem:[%s273_s20 + $0x50] sm:$0xff] %v335_v10   ;;  %340 = vst [vmem:[%s273_s20 + $0x58] sm:$0xff] %v339_v11   ;;  %v347_v13 = vld [vmem:[%s2003_s19 + $0xa8] sm:$0xff]   ;;  %v351_v14 = vld [vmem:[%s2003_s19 + $0xb0] sm:$0xff]  }
  0x18   : > { %344 = vst [vmem:[%s273_s20 + $0x60] sm:$0xff] %v343_v12   ;;  %348 = vst [vmem:[%s273_s20 + $0x68] sm:$0xff] %v347_v13   ;;  %v355_v15 = vld [vmem:[%s2003_s19 + $0xb8] sm:$0xff]  }
  0x19   : > { %352 = vst [vmem:[%s273_s20 + $0x70] sm:$0xff] %v351_v14   ;;  %356 = vst [vmem:[%s273_s20 + $0x78] sm:$0xff] %v355_v15  }
  0x1a PF: > { %p1509_p6 = scmp.ge.s32.totalorder %s1908_s9, 1  ;;  %p444_p7 = scmp.lt.s32.totalorder %s1908_s9, 3 }
  0x1c   : > { %p445_p8 = pnand %p1509_p6, %p444_p7 }
  0x1d   : > { %s451_s21 = sand.u32 (!%p445_p8), 1, %s1892_s27   ;;  %p1511_p9 = scmp.ne.s32.totalorder (!%p445_p8), %s1900_s29, 0 }
  0x1e   : > { %448 = sbr.rel (%p445_p8) target bundleno = 1384 (0x568), region = 89  ;;  %s1510_s22 = sshll.u32 (!%p445_p8), %s451_s21, 7 }
  0x1f   : > { %s2024_s23 = scalar_lea.vmem (!%p445_p8), [#allocation3], %s1510_s22 }
  0x25   : > { %493 = sbr.rel (%p1511_p9) target bundleno = 44 (0x2c), region = 97  ;;  %v1910_v16 = vmov (!%p1511_p9), 0.0  }
  0x26   : > { %494 = vst [vmem:[#allocation2] sm:$0x3] (!%p1511_p9), %v1910_v16 }
  0x2c PF: > { %v1832_v17 = vld [vmem:[%s2323_s1] sm:$0xff]   ;;  %v1833_v18 = vld [vmem:[%s2323_s1 + $0x8] sm:$0xff]   ;;  %vm630_vm0 = vcmask 261120   ;;  %v1836_v21 = vld [vmem:[%s2024_s23 + $0x10] sm:$0xff]   ;;  %p1557_p10 = scmp.ne.s32.totalorder %s1900_s29, 1 }
  0x2d   : > { %1644 = vmatprep.subr.bf16.mxu0 %v1832_v17  ;;  %v1834_v19 = vld [vmem:[%s2024_s23] sm:$0xff]   ;;  %v1835_v20 = vld [vmem:[%s2024_s23 + $0x8] sm:$0xff]   ;;  %v1837_v22 = vld [vmem:[%s2024_s23 + $0x18] sm:$0xff]   ;;  %vm1313_vm1 = vcmask (!%p1557_p10), 1041408   ;;  %vm1913_vm2 = vmmov (!%p1557_p10), 0  }
  0x2e   : > { %1645 = vmatpush3.bf16.msra.mxu0 %v1832_v17  ;;  %1648 = vmatprep.mubr.msk.bf16.mxu0 %vm630_vm0, %v1834_v19  ;;  %v1838_v23 = vld [vmem:[%s2024_s23 + $0x20] sm:$0xff]   ;;  %v1839_v26 = vld [vmem:[%s2024_s23 + $0x28] sm:$0xff]   ;;  %v1840_v28 = vld [vmem:[%s2024_s23 + $0x30] sm:$0xff]  }
  0x2f   : > { %1646 = vmatprep.subr.bf16.mxu0 %v1833_v18  ;;  %v1850_v24 = vld [vmem:[%s2325_s3] sm:$0xff]   ;;  %v1851_v25 = vld [vmem:[%s2325_s3 + $0x8] sm:$0xff]   ;;  %v1852_v27 = vld [vmem:[%s2325_s3 + $0x10] sm:$0xff]  }
  0x30   : > { %1680 = vmatprep.subr.bf16.mxu1 %v1850_v24  ;;  %v1853_v29 = vld [vmem:[%s2325_s3 + $0x18] sm:$0xff]   ;;  %v1854_v31 = vld [vmem:[%s2325_s3 + $0x20] sm:$0xff]   ;;  %v1855_v33 = vld [vmem:[%s2325_s3 + $0x28] sm:$0xff]  }
  0x31   : > { %1681 = vmatpush3.bf16.msra.mxu1 %v1850_v24  ;;  %v1841_v30 = vld [vmem:[%s2024_s23 + $0x38] sm:$0xff]   ;;  %v1842_v32 = vld [vmem:[%s2024_s23 + $0x40] sm:$0xff]   ;;  %v1843_v34 = vld [vmem:[%s2024_s23 + $0x48] sm:$0xff]  }
  0x32   : > { %1647 = vmatpush3.bf16.msra.mxu0 %v1833_v18  ;;  %1682 = vmatprep.subr.bf16.mxu1 %v1851_v25  ;;  %v1844_v35 = vld [vmem:[%s2024_s23 + $0x50] sm:$0xff]   ;;  %v1845_v36 = vld [vmem:[%s2024_s23 + $0x58] sm:$0xff]   ;;  %v1846_v37 = vld [vmem:[%s2024_s23 + $0x60] sm:$0xff]  }
  0x33   : > { %v1847_v38 = vld [vmem:[%s2024_s23 + $0x68] sm:$0xff]   ;;  %v1848_v39 = vld [vmem:[%s2024_s23 + $0x70] sm:$0xff]   ;;  %v1849_v40 = vld [vmem:[%s2024_s23 + $0x78] sm:$0xff]  }
  0x34   : > { %v1856_v41 = vld [vmem:[%s2325_s3 + $0x30] sm:$0xff]   ;;  %v1857_v42 = vld [vmem:[%s2325_s3 + $0x38] sm:$0xff]   ;;  %v2092_v43 = vld [vmem:[%s2324_s2] ss:$0 sm:$0xff] }
  0x35   : > { %1649 = vmatmul.mubr.msk.bf16.vlgmr.msra.gmra.mrb[0].mxu0 %vm630_vm0, %v1835_v20  ;;  %1683 = vmatpush3.bf16.msra.mxu1 %v1851_v25 }
  0x36   : > { %1652 = vmatprep.mubr.msk.bf16.mxu0 %vm630_vm0, %v1836_v21  ;;  %1684 = vmatprep.subr.bf16.mxu1 %v1852_v27 }
  0x39   : > { %1685 = vmatpush3.bf16.msra.mxu1 %v1852_v27 }
  0x3a   : > { %1686 = vmatprep.subr.bf16.mxu1 %v1853_v29 }
  0x3d   : > { %1653 = vmatmul.mubr.msk.bf16.gmra.mrb[4].mxu0 %vm630_vm0, %v1837_v22  ;;  %1687 = vmatpush3.bf16.msra.mxu1 %v1853_v29 }
  0x3e   : > { %1656 = vmatprep.mubr.msk.bf16.mxu0 %vm630_vm0, %v1838_v23  ;;  %1688 = vmatprep.subr.bf16.mxu1 %v1854_v31 }
  0x41   : > { %1689 = vmatpush3.bf16.msra.mxu1 %v1854_v31 }
  0x42   : > { %1690 = vmatprep.subr.bf16.mxu1 %v1855_v33 }
  0x45   : > { %1657 = vmatmul.mubr.msk.bf16.gmra.mrb[8].mxu0 %vm630_vm0, %v1839_v26  ;;  %1691 = vmatpush3.bf16.msra.mxu1 %v1855_v33 }
  0x46   : > { %1660 = vmatprep.mubr.msk.bf16.mxu0 %vm630_vm0, %v1840_v28  ;;  %1692 = vmatprep.subr.bf16.mxu1 %v1856_v41 }
  0x49   : > { %1693 = vmatpush3.bf16.msra.mxu1 %v1856_v41 }
  0x4a   : > { %1694 = vmatprep.subr.bf16.mxu1 %v1857_v42 }
  0x4d   : > { %1661 = vmatmul.mubr.msk.bf16.gmra.mrb[12].mxu0 %vm630_vm0, %v1841_v30  ;;  %1695 = vmatpush3.bf16.msra.mxu1 %v1857_v42 }
  0x4e   : > { %1664 = vmatprep.mubr.msk.bf16.mxu0 %vm630_vm0, %v1842_v32 }
  0x55   : > { %1665 = vmatmul.mubr.msk.bf16.gmra.mrb[16].mxu0 %vm630_vm0, %v1843_v34 }
  0x56   : > { %1668 = vmatprep.mubr.msk.bf16.mxu0 %vm630_vm0, %v1844_v35 }
  0x5d   : > { %1669 = vmatmul.mubr.msk.bf16.gmra.mrb[20].mxu0 %vm630_vm0, %v1845_v36 }
  0x5e   : > { %1672 = vmatprep.mubr.msk.bf16.mxu0 %vm630_vm0, %v1846_v37 }
  0x65   : > { %1673 = vmatmul.mubr.msk.bf16.gmra.mrb[24].mxu0 %vm630_vm0, %v1847_v38 }
  0x66   : > { %1676 = vmatprep.mubr.msk.bf16.mxu0 %vm630_vm0, %v1848_v39 }
  0x6d   : > { %1677 = vmatmul.mubr.msk.bf16.gmra.mrb[28].mxu0 %vm630_vm0, %v1849_v40 }
 0x108   : > { %v1650_v44 = vpop.f32.mrb[0].mxu0 }
 0x109   : > { %v722_v45 = vadd.f32 %v1650_v44, %v2092_v43  ;;  %v713_v46 = vpop.f32.mrb[1].mxu0 }
 0x10a   : > { %v714_v47 = vadd.f32 %v2092_v43, %v713_v46  ;;  %v1651_v48 = vpop.f32.mrb[2].mxu0 }
 0x10b   : > { %v725_v49 = vadd.f32 %v1651_v48, %v2092_v43  ;;  %v716_v50 = vpop.f32.mrb[3].mxu0  ;;  %v842_v52 = vmax.f32 %v722_v45, 0.0 }
 0x10c   : > { %v717_v51 = vadd.f32 %v2092_v43, %v716_v50  ;;  %v840_v54 = vmax.f32 %v714_v47, 0.0 }
 0x10d   : > { %v843_v53 = vmax.f32 %v725_v49, 0.0 }
 0x10e   : > { %v841_v55 = vmax.f32 %v717_v51, 0.0 }
 0x10f   : > { %v873_v56 = vpack.c.bf16 %v843_v53, %v842_v52 }
 0x110   : > { %v1654_v57 = vpop.f32.mrb[4].mxu0  ;;  %v872_v58 = vpack.c.bf16 %v841_v55, %v840_v54 }
 0x111   : > { %v738_v59 = vadd.f32 %v1654_v57, %v2092_v43  ;;  %v729_v60 = vpop.f32.mrb[5].mxu0 }
 0x112   : > { %v730_v61 = vadd.f32 %v2092_v43, %v729_v60  ;;  %v1655_v62 = vpop.f32.mrb[6].mxu0  ;;  %1696 = vmatprep.mubr.bf16.mxu1 %v872_v58 }
 0x113   : > { %v741_v63 = vadd.f32 %v1655_v62, %v2092_v43  ;;  %v732_v0 = vpop.f32.mrb[7].mxu0  ;;  %1697 = vmatmul.mubr.bf16.vlgmr.msra.gmra.mrb[0].mxu1 %v873_v56  ;;  %v846_v2 = vmax.f32 %v738_v59, 0.0 }
 0x114   : > { %v733_v1 = vadd.f32 %v2092_v43, %v732_v0  ;;  %v844_v4 = vmax.f32 %v730_v61, 0.0 }
 0x115   : > { %v847_v3 = vmax.f32 %v741_v63, 0.0 }
 0x116   : > { %v845_v5 = vmax.f32 %v733_v1, 0.0 }
 0x117   : > { %v875_v6 = vpack.c.bf16 %v847_v3, %v846_v2 }
 0x118   : > { %v874_v7 = vpack.c.bf16 %v845_v5, %v844_v4  ;;  %v1658_v8 = vpop.f32.mrb[8].mxu0 }
 0x119   : > { %v754_v9 = vadd.f32 %v1658_v8, %v2092_v43  ;;  %v745_v10 = vpop.f32.mrb[9].mxu0 }
 0x11a   : > { %v746_v11 = vadd.f32 %v2092_v43, %v745_v10  ;;  %v1659_v12 = vpop.f32.mrb[10].mxu0  ;;  %1700 = vmatprep.mubr.bf16.mxu1 %v874_v7 }
 0x11b   : > { %v757_v13 = vadd.f32 %v1659_v12, %v2092_v43  ;;  %v748_v14 = vpop.f32.mrb[11].mxu0  ;;  %1701 = vmatmul.mubr.bf16.gmra.mrb[4].mxu1 %v875_v6  ;;  %v850_v16 = vmax.f32 %v754_v9, 0.0 }
 0x11c   : > { %v749_v15 = vadd.f32 %v2092_v43, %v748_v14  ;;  %v848_v18 = vmax.f32 %v746_v11, 0.0 }
 0x11d   : > { %v851_v17 = vmax.f32 %v757_v13, 0.0 }
 0x11e   : > { %v849_v19 = vmax.f32 %v749_v15, 0.0 }
 0x11f   : > { %v877_v20 = vpack.c.bf16 %v851_v17, %v850_v16 }
 0x120   : > { %v876_v21 = vpack.c.bf16 %v849_v19, %v848_v18  ;;  %v1662_v22 = vpop.f32.mrb[12].mxu0 }
 0x121   : > { %v770_v23 = vadd.f32 %v1662_v22, %v2092_v43  ;;  %v761_v24 = vpop.f32.mrb[13].mxu0 }
 0x122   : > { %v762_v25 = vadd.f32 %v2092_v43, %v761_v24  ;;  %v1663_v26 = vpop.f32.mrb[14].mxu0  ;;  %1704 = vmatprep.mubr.bf16.mxu1 %v876_v21 }
 0x123   : > { %v773_v27 = vadd.f32 %v1663_v26, %v2092_v43  ;;  %v764_v28 = vpop.f32.mrb[15].mxu0  ;;  %1705 = vmatmul.mubr.bf16.gmra.mrb[8].mxu1 %v877_v20  ;;  %v854_v30 = vmax.f32 %v770_v23, 0.0 }
 0x124   : > { %v765_v29 = vadd.f32 %v2092_v43, %v764_v28  ;;  %v852_v32 = vmax.f32 %v762_v25, 0.0 }
 0x125   : > { %v855_v31 = vmax.f32 %v773_v27, 0.0 }
 0x126   : > { %v853_v33 = vmax.f32 %v765_v29, 0.0  ;;  %v1911_v29 = vmov 1966171168  }
 0x127   : > { %v879_v34 = vpack.c.bf16 %v855_v31, %v854_v30  ;;  %v1244_v30 = vunpack.c.l.s4 %v1911_v29  ;;  %v1246_v31 = vlaneseq }
 0x128   : > { %v878_v35 = vpack.c.bf16 %v853_v33, %v852_v32  ;;  %v1666_v36 = vpop.f32.mrb[16].mxu0 }
 0x129   : > { %v786_v37 = vadd.f32 %v1666_v36, %v2092_v43  ;;  %v777_v38 = vpop.f32.mrb[17].mxu0  ;;  %v1245_v32 = vunpack.c.0.s8 %v1244_v30  ;;  %v1247_v33 = vshrl.u32 %v1246_v31, 7 }
 0x12a   : > { %v778_v39 = vadd.f32 %v2092_v43, %v777_v38  ;;  %v1667_v40 = vpop.f32.mrb[18].mxu0  ;;  %1708 = vmatprep.mubr.bf16.mxu1 %v878_v35  ;;  %v2141_v38 = vld [vmem:[%s2326_s4] ss:$0 sm:$0xff] }
 0x12b   : > { %v789_v41 = vadd.f32 %v1667_v40, %v2092_v43  ;;  %v780_v42 = vpop.f32.mrb[19].mxu0  ;;  %1709 = vmatmul.mubr.bf16.gmra.mrb[12].mxu1 %v879_v34  ;;  %v858_v45 = vmax.f32 %v786_v37, 0.0  ;;  %v2129_v34 = vld.sshfl [vmem:[%s2329_s7] sm:$0x11 pattern:$0x75316420]  ;;  %v2133_v35 = vsub.s32 %v1245_v32, %v1247_v33 }
 0x12c   : > { %v781_v44 = vadd.f32 %v2092_v43, %v780_v42  ;;  %v856_v47 = vmax.f32 %v778_v39, 0.0 }
 0x12d   : > { %v859_v46 = vmax.f32 %v789_v41, 0.0  ;;  %v1249_v36 = vrot.slane %v2129_v34, %v2133_v35 }
 0x12e   : > { %v857_v48 = vmax.f32 %v781_v44, 0.0 }
 0x12f   : > { %v881_v49 = vpack.c.bf16 %v859_v46, %v858_v45 }
 0x130   : > { %v880_v50 = vpack.c.bf16 %v857_v48, %v856_v47  ;;  %v1670_v51 = vpop.f32.mrb[20].mxu0 }
 0x131   : > { %v802_v52 = vadd.f32 %v1670_v51, %v2092_v43  ;;  %v793_v53 = vpop.f32.mrb[21].mxu0 }
 0x132   : > { %v794_v54 = vadd.f32 %v2092_v43, %v793_v53  ;;  %v1671_v55 = vpop.f32.mrb[22].mxu0  ;;  %1712 = vmatprep.mubr.bf16.mxu1 %v880_v50 }
 0x133   : > { %v805_v56 = vadd.f32 %v1671_v55, %v2092_v43  ;;  %v796_v57 = vpop.f32.mrb[23].mxu0  ;;  %1713 = vmatmul.mubr.bf16.gmra.mrb[16].mxu1 %v881_v49  ;;  %v862_v59 = vmax.f32 %v802_v52, 0.0 }
 0x134   : > { %v797_v58 = vadd.f32 %v2092_v43, %v796_v57  ;;  %v860_v61 = vmax.f32 %v794_v54, 0.0 }
 0x135   : > { %v863_v60 = vmax.f32 %v805_v56, 0.0 }
 0x136   : > { %v861_v62 = vmax.f32 %v797_v58, 0.0 }
 0x137   : > { %v883_v63 = vpack.c.bf16 %v863_v60, %v862_v59 }
 0x138   : > { %v882_v0 = vpack.c.bf16 %v861_v62, %v860_v61  ;;  %v1674_v1 = vpop.f32.mrb[24].mxu0 }
 0x139   : > { %v818_v2 = vadd.f32 %v1674_v1, %v2092_v43  ;;  %v809_v3 = vpop.f32.mrb[25].mxu0 }
 0x13a   : > { %v810_v4 = vadd.f32 %v2092_v43, %v809_v3  ;;  %v1675_v5 = vpop.f32.mrb[26].mxu0  ;;  %1716 = vmatprep.mubr.bf16.mxu1 %v882_v0 }
 0x13b   : > { %v821_v6 = vadd.f32 %v1675_v5, %v2092_v43  ;;  %v812_v7 = vpop.f32.mrb[27].mxu0  ;;  %1717 = vmatmul.mubr.bf16.gmra.mrb[20].mxu1 %v883_v63  ;;  %v866_v9 = vmax.f32 %v818_v2, 0.0 }
 0x13c   : > { %v813_v8 = vadd.f32 %v2092_v43, %v812_v7  ;;  %v864_v11 = vmax.f32 %v810_v4, 0.0 }
 0x13d   : > { %v867_v10 = vmax.f32 %v821_v6, 0.0 }
 0x13e   : > { %v865_v12 = vmax.f32 %v813_v8, 0.0 }
 0x13f   : > { %v885_v13 = vpack.c.bf16 %v867_v10, %v866_v9 }
 0x140   : > { %v884_v14 = vpack.c.bf16 %v865_v12, %v864_v11  ;;  %v1678_v15 = vpop.f32.mrb[28].mxu0 }
 0x141   : > { %v834_v16 = vadd.f32 %v1678_v15, %v2092_v43  ;;  %v825_v17 = vpop.f32.mrb[29].mxu0 }
 0x142   : > { %v826_v18 = vadd.f32 %v2092_v43, %v825_v17  ;;  %v1679_v19 = vpop.f32.mrb[30].mxu0  ;;  %1720 = vmatprep.mubr.bf16.mxu1 %v884_v14 }
 0x143   : > { %v837_v20 = vadd.f32 %v1679_v19, %v2092_v43  ;;  %v828_v21 = vpop.f32.mrb[31].mxu0  ;;  %1721 = vmatmul.mubr.bf16.gmra.mrb[24].mxu1 %v885_v13  ;;  %v870_v23 = vmax.f32 %v834_v16, 0.0 }
 0x144   : > { %v829_v22 = vadd.f32 %v2092_v43, %v828_v21  ;;  %v868_v25 = vmax.f32 %v826_v18, 0.0  ;;  %v1242_v43 = vcombine.high %v2129_v34, %v2129_v34  ;;  %v1328_v34 = vld [vmem:[%s2327_s5 + $0x8] sm:$0xff] (!%p1557_p10) }
 0x145   : > { %v871_v24 = vmax.f32 %v837_v20, 0.0 }
 0x146   : > { %v869_v26 = vmax.f32 %v829_v22, 0.0  ;;  %v1256_v37 = vrot.slane %v1242_v43, %v2133_v35 }
 0x147   : > { %v887_v27 = vpack.c.bf16 %v871_v24, %v870_v23 }
 0x148   : > { %v886_v28 = vpack.c.bf16 %v869_v26, %v868_v25  ;;  %1291 = vmatprep.mubr.bf16.mxu0 %v1256_v37 }
 0x14a   : > { %1724 = vmatprep.mubr.bf16.mxu1 %v886_v28 }
 0x14b   : > { %1725 = vmatmul.mubr.bf16.gmra.mrb[28].mxu1 %v887_v27 }
 0x1e6   : > { %v1698_v39 = vpop.f32.mrb[0].mxu1 }
 0x1e7   : > { %v1002_v40 = vadd.f32 %v1698_v39, %v2141_v38  ;;  %v993_v41 = vpop.f32.mrb[1].mxu1 }
 0x1e8   : > { %v994_v42 = vadd.f32 %v2141_v38, %v993_v41  ;;  %v1699_v44 = vpop.f32.mrb[2].mxu1 }
 0x1e9   : > { %v1122_v45 = vmax.f32 %v1002_v40, 1e-06  ;;  %v1005_v46 = vadd.f32 %v1699_v44, %v2141_v38  ;;  %v996_v47 = vpop.f32.mrb[3].mxu1 }
 0x1ea   : > { %v1120_v48 = vmax.f32 %v994_v42, 1e-06  ;;  %v997_v49 = vadd.f32 %v2141_v38, %v996_v47 }
 0x1eb   : > { %v1154_v50 = vmul.f32 %v1122_v45, %v1122_v45  ;;  %v1123_v51 = vmax.f32 %v1005_v46, 1e-06 }
 0x1ec   : > { %v1152_v52 = vmul.f32 %v1120_v48, %v1120_v48  ;;  %v1121_v53 = vmax.f32 %v997_v49, 1e-06 }
 0x1ed   : > { %v1155_v54 = vmul.f32 %v1123_v51, %v1123_v51  ;;  %v2147_v57 = vmul.f32 %v1154_v50, %v1122_v45 }
 0x1ee   : > { %v1153_v55 = vmul.f32 %v1121_v53, %v1121_v53  ;;  %v1702_v56 = vpop.f32.mrb[4].mxu1  ;;  %v2152_v61 = vmul.f32 %v1152_v52, %v1120_v48 }
 0x1ef   : > { %v2149_v58 = vmul.f32 %v1155_v54, %v1123_v51  ;;  %v1018_v59 = vadd.f32 %v1702_v56, %v2141_v38  ;;  %v1009_v60 = vpop.f32.mrb[5].mxu1 }
 0x1f0   : > { %v2154_v62 = vmul.f32 %v1153_v55, %v1121_v53  ;;  %v1010_v63 = vadd.f32 %v2141_v38, %v1009_v60  ;;  %v1703_v0 = vpop.f32.mrb[6].mxu1 }
 0x1f1   : > { %v1219_v1 = vpack.c.bf16 %v2149_v58, %v2147_v57  ;;  %v1126_v2 = vmax.f32 %v1018_v59, 1e-06  ;;  %v1021_v3 = vadd.f32 %v1703_v0, %v2141_v38  ;;  %v1012_v4 = vpop.f32.mrb[7].mxu1 }
 0x1f2   : > { %v1218_v5 = vpack.c.bf16 %v2154_v62, %v2152_v61  ;;  %v1124_v6 = vmax.f32 %v1010_v63, 1e-06  ;;  %v1013_v7 = vadd.f32 %v2141_v38, %v1012_v4 }
 0x1f3   : > { %v1158_v8 = vmul.f32 %v1126_v2, %v1126_v2  ;;  %v1127_v9 = vmax.f32 %v1021_v3, 1e-06 }
 0x1f4   : > { %v1156_v10 = vmul.f32 %v1124_v6, %v1124_v6  ;;  %v1125_v11 = vmax.f32 %v1013_v7, 1e-06 }
 0x1f5   : > { %v1159_v12 = vmul.f32 %v1127_v9, %v1127_v9  ;;  %v2163_v15 = vmul.f32 %v1158_v8, %v1126_v2 }
 0x1f6   : > { %v1157_v13 = vmul.f32 %v1125_v11, %v1125_v11  ;;  %v1706_v14 = vpop.f32.mrb[8].mxu1  ;;  %v2168_v19 = vmul.f32 %v1156_v10, %v1124_v6 }
 0x1f7   : > { %v2165_v16 = vmul.f32 %v1159_v12, %v1127_v9  ;;  %v1034_v17 = vadd.f32 %v1706_v14, %v2141_v38  ;;  %v1025_v18 = vpop.f32.mrb[9].mxu1 }
 0x1f8   : > { %v2170_v20 = vmul.f32 %v1157_v13, %v1125_v11  ;;  %v1026_v21 = vadd.f32 %v2141_v38, %v1025_v18  ;;  %v1707_v22 = vpop.f32.mrb[10].mxu1 }
 0x1f9   : > { %v1221_v23 = vpack.c.bf16 %v2165_v16, %v2163_v15  ;;  %v1130_v24 = vmax.f32 %v1034_v17, 1e-06  ;;  %v1037_v25 = vadd.f32 %v1707_v22, %v2141_v38  ;;  %v1028_v26 = vpop.f32.mrb[11].mxu1 }
 0x1fa   : > { %v1220_v27 = vpack.c.bf16 %v2170_v20, %v2168_v19  ;;  %v1128_v28 = vmax.f32 %v1026_v21, 1e-06  ;;  %v1029_v29 = vadd.f32 %v2141_v38, %v1028_v26 }
 0x1fb   : > { %v1162_v30 = vmul.f32 %v1130_v24, %v1130_v24  ;;  %v1131_v31 = vmax.f32 %v1037_v25, 1e-06 }
 0x1fc   : > { %v1160_v32 = vmul.f32 %v1128_v28, %v1128_v28  ;;  %v1129_v33 = vmax.f32 %v1029_v29, 1e-06 }
 0x1fd   : > { %v1163_v43 = vmul.f32 %v1131_v31, %v1131_v31  ;;  %v2179_v40 = vmul.f32 %v1162_v30, %v1130_v24 }
 0x1fe   : > { %v1161_v37 = vmul.f32 %v1129_v33, %v1129_v33  ;;  %v1710_v39 = vpop.f32.mrb[12].mxu1  ;;  %v2184_v45 = vmul.f32 %v1160_v32, %v1128_v28 }
 0x1ff   : > { %v2181_v41 = vmul.f32 %v1163_v43, %v1131_v31  ;;  %v1050_v42 = vadd.f32 %v1710_v39, %v2141_v38  ;;  %v1041_v44 = vpop.f32.mrb[13].mxu1 }
 0x200   : > { %v2186_v46 = vmul.f32 %v1161_v37, %v1129_v33  ;;  %v1042_v47 = vadd.f32 %v2141_v38, %v1041_v44  ;;  %v1711_v48 = vpop.f32.mrb[14].mxu1 }
 0x201   : > { %v1223_v49 = vpack.c.bf16 %v2181_v41, %v2179_v40  ;;  %v1134_v50 = vmax.f32 %v1050_v42, 1e-06  ;;  %v1053_v51 = vadd.f32 %v1711_v48, %v2141_v38  ;;  %v1044_v52 = vpop.f32.mrb[15].mxu1 }
 0x202   : > { %v1222_v53 = vpack.c.bf16 %v2186_v46, %v2184_v45  ;;  %v1132_v54 = vmax.f32 %v1042_v47, 1e-06  ;;  %v1045_v55 = vadd.f32 %v2141_v38, %v1044_v52  ;;  %v1216_v46 = vld [vmem:[#allocation2] sm:$0x3] }
 0x203   : > { %v1166_v56 = vmul.f32 %v1134_v50, %v1134_v50  ;;  %v1135_v59 = vmax.f32 %v1053_v51, 1e-06 }
 0x204   : > { %v1164_v60 = vmul.f32 %v1132_v54, %v1132_v54  ;;  %v1133_v63 = vmax.f32 %v1045_v55, 1e-06 }
 0x205   : > { %v1167_v0 = vmul.f32 %v1135_v59, %v1135_v59  ;;  %v2195_v4 = vmul.f32 %v1166_v56, %v1134_v50 }
 0x206   : > { %v1165_v2 = vmul.f32 %v1133_v63, %v1133_v63  ;;  %v1714_v3 = vpop.f32.mrb[16].mxu1  ;;  %v2200_v9 = vmul.f32 %v1164_v60, %v1132_v54 }
 0x207   : > { %v2197_v6 = vmul.f32 %v1167_v0, %v1135_v59  ;;  %v1066_v7 = vadd.f32 %v1714_v3, %v2141_v38  ;;  %v1057_v8 = vpop.f32.mrb[17].mxu1 }
 0x208   : > { %v2202_v10 = vmul.f32 %v1165_v2, %v1133_v63  ;;  %v1058_v11 = vadd.f32 %v2141_v38, %v1057_v8  ;;  %v1715_v12 = vpop.f32.mrb[18].mxu1 }
 0x209   : > { %v1225_v13 = vpack.c.bf16 %v2197_v6, %v2195_v4  ;;  %v1138_v14 = vmax.f32 %v1066_v7, 1e-06  ;;  %v1069_v17 = vadd.f32 %v1715_v12, %v2141_v38  ;;  %v1060_v18 = vpop.f32.mrb[19].mxu1  ;;  %v1327_v4 = vld [vmem:[%s2327_s5] sm:$0xff] (!%p1557_p10) }
 0x20a   : > { %v1224_v21 = vpack.c.bf16 %v2202_v10, %v2200_v9  ;;  %v1136_v22 = vmax.f32 %v1058_v11, 1e-06  ;;  %v1061_v24 = vadd.f32 %v2141_v38, %v1060_v18  ;;  %v1764_v6 = vpack.c.bf16 (!%p1557_p10), %v1328_v34, %v1327_v4 }
 0x20b   : > { %v1170_v25 = vmul.f32 %v1138_v14, %v1138_v14  ;;  %v1139_v26 = vmax.f32 %v1069_v17, 1e-06 }
 0x20c   : > { %v1168_v28 = vmul.f32 %v1136_v22, %v1136_v22  ;;  %v1137_v29 = vmax.f32 %v1061_v24, 1e-06 }
 0x20d   : > { %v1171_v30 = vmul.f32 %v1139_v26, %v1139_v26  ;;  %v1202_v33 = vmul.f32 %v1170_v25, %v1138_v14 }
 0x20e   : > { %v1169_v31 = vmul.f32 %v1137_v29, %v1137_v29  ;;  %v1718_v32 = vpop.f32.mrb[20].mxu1  ;;  %v1200_v42 = vmul.f32 %v1168_v28, %v1136_v22 }
 0x20f   : > { %v1203_v43 = vmul.f32 %v1171_v30, %v1139_v26  ;;  %v1082_v37 = vadd.f32 %v1718_v32, %v2141_v38  ;;  %v1073_v39 = vpop.f32.mrb[21].mxu1 }
 0x210   : > { %v1201_v44 = vmul.f32 %v1169_v31, %v1137_v29  ;;  %v1074_v47 = vadd.f32 %v2141_v38, %v1073_v39  ;;  %v1719_v48 = vpop.f32.mrb[22].mxu1 }
 0x211   : > { %v1142_v50 = vmax.f32 %v1082_v37, 1e-06  ;;  %v1085_v51 = vadd.f32 %v1719_v48, %v2141_v38  ;;  %v1076_v52 = vpop.f32.mrb[23].mxu1  ;;  %v1227_v54 = vpack.c.bf16 %v1203_v43, %v1202_v33 }
 0x212   : > { %v1140_v55 = vmax.f32 %v1074_v47, 1e-06  ;;  %v1077_v56 = vadd.f32 %v2141_v38, %v1076_v52  ;;  %v1226_v59 = vpack.c.bf16 %v1201_v44, %v1200_v42 }
 0x213   : > { %v1174_v60 = vmul.f32 %v1142_v50, %v1142_v50  ;;  %v1143_v63 = vmax.f32 %v1085_v51, 1e-06 }
 0x214   : > { %v1172_v0 = vmul.f32 %v1140_v55, %v1140_v55  ;;  %v1141_v2 = vmax.f32 %v1077_v56, 1e-06  ;;  %1605 = vmatprep.subr.bf16.mxu0 %v1226_v59 }
 0x215   : > { %v1175_v3 = vmul.f32 %v1143_v63, %v1143_v63  ;;  %1606 = vmatpush3.bf16.msra.mxu0 %v1218_v5  ;;  %v1206_v11 = vmul.f32 %v1174_v60, %v1142_v50 }
 0x216   : > { %v1173_v7 = vmul.f32 %v1141_v2, %v1141_v2  ;;  %v1722_v8 = vpop.f32.mrb[24].mxu1  ;;  %1607 = vmatprep.subr.bf16.mxu0 %v1227_v54  ;;  %v1204_v18 = vmul.f32 %v1172_v0, %v1140_v55 }
 0x217   : > { %v1207_v12 = vmul.f32 %v1175_v3, %v1143_v63  ;;  %v1098_v14 = vadd.f32 %v1722_v8, %v2141_v38  ;;  %v1089_v17 = vpop.f32.mrb[25].mxu1 }
 0x218   : > { %v1205_v22 = vmul.f32 %v1173_v7, %v1141_v2  ;;  %v1090_v24 = vadd.f32 %v2141_v38, %v1089_v17  ;;  %v1723_v25 = vpop.f32.mrb[26].mxu1 }
 0x219   : > { %v1146_v26 = vmax.f32 %v1098_v14, 1e-06  ;;  %v1101_v28 = vadd.f32 %v1723_v25, %v2141_v38  ;;  %v1092_v29 = vpop.f32.mrb[27].mxu1  ;;  %1608 = vmatpush3.bf16.msra.mxu0 %v1219_v1  ;;  %v1229_v61 = vpack.c.bf16 %v1207_v12, %v1206_v11 }
 0x21a   : > { %v1144_v62 = vmax.f32 %v1090_v24, 1e-06  ;;  %v1093_v5 = vadd.f32 %v2141_v38, %v1092_v29  ;;  %v1228_v30 = vpack.c.bf16 %v1205_v22, %v1204_v18  ;;  %v1329_v22 = vld [vmem:[%s2327_s5 + $0x10] sm:$0xff] (!%p1557_p10)  ;;  %v1330_v24 = vld [vmem:[%s2327_s5 + $0x18] sm:$0xff] (!%p1557_p10) }
 0x21b   : > { %v1178_v31 = vmul.f32 %v1146_v26, %v1146_v26  ;;  %v1147_v32 = vmax.f32 %v1101_v28, 1e-06  ;;  %v1767_v25 = vpack.c.bf16 (!%p1557_p10), %v1330_v24, %v1329_v22  ;;  %v1332_v28 = vld [vmem:[%s2327_s5 + $0x28] sm:$0xff] (!%p1557_p10) }
 0x21c   : > { %v1176_v33 = vmul.f32 %v1144_v62, %v1144_v62  ;;  %v1145_v43 = vmax.f32 %v1093_v5, 1e-06  ;;  %1609 = vmatprep.subr.bf16.mxu0 %v1228_v30  ;;  %v1335_v30 = vld [vmem:[%s2327_s5 + $0x40] sm:$0xff] (!%p1557_p10) }
 0x21d   : > { %v1179_v37 = vmul.f32 %v1147_v32, %v1147_v32  ;;  %1610 = vmatpush3.bf16.msra.mxu0 %v1220_v27  ;;  %v1210_v57 = vmul.f32 %v1178_v31, %v1146_v26  ;;  %v1331_v26 = vld [vmem:[%s2327_s5 + $0x20] sm:$0xff] (!%p1557_p10)  ;;  %v1336_v31 = vld [vmem:[%s2327_s5 + $0x48] sm:$0xff] (!%p1557_p10) }
 0x21e   : > { %v1177_v39 = vmul.f32 %v1145_v43, %v1145_v43  ;;  %v1726_v42 = vpop.f32.mrb[28].mxu1  ;;  %1611 = vmatprep.subr.bf16.mxu0 %v1229_v61  ;;  %v1208_v47 = vmul.f32 %v1176_v33, %v1144_v62  ;;  %v1770_v29 = vpack.c.bf16 (!%p1557_p10), %v1332_v28, %v1331_v26  ;;  %v1333_v61 = vld [vmem:[%s2327_s5 + $0x30] sm:$0xff] (!%p1557_p10)  ;;  %v1334_v62 = vld [vmem:[%s2327_s5 + $0x38] sm:$0xff] (!%p1557_p10) }
 0x21f   : > { %v1211_v58 = vmul.f32 %v1179_v37, %v1147_v32  ;;  %v1114_v1 = vadd.f32 %v1726_v42, %v2141_v38  ;;  %v1105_v44 = vpop.f32.mrb[29].mxu1  ;;  %v1773_v5 = vpack.c.bf16 (!%p1557_p10), %v1334_v62, %v1333_v61  ;;  %v1776_v32 = vpack.c.bf16 (!%p1557_p10), %v1336_v31, %v1335_v30  ;;  %v1337_v33 = vld [vmem:[%s2327_s5 + $0x50] sm:$0xff] (!%p1557_p10)  ;;  %v1340_v42 = vld [vmem:[%s2327_s5 + $0x68] sm:$0xff] (!%p1557_p10) }
 0x220   : > { %v1209_v48 = vmul.f32 %v1177_v39, %v1145_v43  ;;  %v1106_v50 = vadd.f32 %v2141_v38, %v1105_v44  ;;  %v1727_v51 = vpop.f32.mrb[30].mxu1  ;;  %v1338_v43 = vld [vmem:[%s2327_s5 + $0x58] sm:$0xff] (!%p1557_p10)  ;;  %v1339_v39 = vld [vmem:[%s2327_s5 + $0x60] sm:$0xff] (!%p1557_p10) }
 0x221   : > { %v1150_v52 = vmax.f32 %v1114_v1, 1e-06  ;;  %v1117_v54 = vadd.f32 %v1727_v51, %v2141_v38  ;;  %v1108_v55 = vpop.f32.mrb[31].mxu1  ;;  %1612 = vmatpush3.bf16.msra.mxu0 %v1221_v23  ;;  %v1231_v19 = vpack.c.bf16 %v1211_v58, %v1210_v57  ;;  %v1779_v37 = vpack.c.bf16 (!%p1557_p10), %v1338_v43, %v1337_v33  ;;  %v1341_v1 = vld [vmem:[%s2327_s5 + $0x70] sm:$0xff] (!%p1557_p10)  ;;  %v1342_v44 = vld [vmem:[%s2327_s5 + $0x78] sm:$0xff] (!%p1557_p10) }
 0x222   : > { %v1148_v20 = vmax.f32 %v1106_v50, 1e-06  ;;  %v1109_v27 = vadd.f32 %v2141_v38, %v1108_v55  ;;  %v1230_v56 = vpack.c.bf16 %v1209_v48, %v1208_v47  ;;  %v1914_v57 = vmov (!%p1557_p10), 0.0  }
 0x223   : > { %v1182_v59 = vmul.f32 %v1150_v52, %v1150_v52  ;;  %v1151_v60 = vmax.f32 %v1117_v54, 1e-06  ;;  %v1782_v58 = vpack.c.bf16 (!%p1557_p10), %v1340_v42, %v1339_v39  ;;  %v1785_v47 = vpack.c.bf16 (!%p1557_p10), %v1342_v44, %v1341_v1 }
 0x224   : > { %v1180_v63 = vmul.f32 %v1148_v20, %v1148_v20  ;;  %v1149_v0 = vmax.f32 %v1109_v27, 1e-06  ;;  %1613 = vmatprep.subr.bf16.mxu0 %v1230_v56  ;;  %v1558_v56 = vld [vmem:[%s2328_s6] ss:$0 sm:$0xff] (!%p1557_p10) }
 0x225   : > { %v1183_v2 = vmul.f32 %v1151_v60, %v1151_v60  ;;  %1614 = vmatpush3.bf16.msra.mxu0 %v1222_v53  ;;  %v1214_v7 = vmul.f32 %v1182_v59, %v1150_v52 }
 0x226   : > { %v1181_v3 = vmul.f32 %v1149_v0, %v1149_v0  ;;  %1615 = vmatprep.subr.bf16.mxu0 %v1231_v19  ;;  %v1212_v16 = vmul.f32 %v1180_v63, %v1148_v20 }
 0x227   : > { %v1215_v15 = vmul.f32 %v1183_v2, %v1151_v60 }
 0x228   : > { %v1213_v23 = vmul.f32 %v1181_v3, %v1149_v0 }
 0x229   : > { %1616 = vmatpush3.bf16.msra.mxu0 %v1223_v49  ;;  %v1233_v38 = vpack.c.bf16 %v1215_v15, %v1214_v7 }
 0x22a   : > { %v1232_v8 = vpack.c.bf16 %v1213_v23, %v1212_v16 }
 0x22c   : > { %1617 = vmatprep.subr.bf16.mxu0 %v1232_v8 }
 0x22d   : > { %1618 = vmatpush3.bf16.msra.mxu0 %v1224_v21 }
 0x22e   : > { %1619 = vmatprep.subr.bf16.mxu0 %v1233_v38 }
 0x231   : > { %1620 = vmatpush3.bf16.msra.mxu0 %v1225_v13 }
 0x234   : > { %1292 = vmatmul.mubr.bf16.vlgmr.msra.gmra.mrb[32].mxu0 %v1249_v36  ;;  %v1912_v36 = vmov (!%p1557_p10), 0.0|0.0  }
 0x235   : > { %1763 = vmatprep.subr.bf16.mxu0 (!%p1557_p10), %v1912_v36  ;;  %1760 = vmatprep.mubr.msk.f32.mxu0 (!%p1557_p10), %vm1913_vm2, %v1914_v57 }
 0x236   : > { %1765 = vmatpush3.bf16.msra.mxu0 (!%p1557_p10), %v1764_v6 }
 0x237   : > { %1766 = vmatprep.subr.bf16.mxu0 (!%p1557_p10), %v1912_v36 }
 0x23a   : > { %1768 = vmatpush3.bf16.msra.mxu0 (!%p1557_p10), %v1767_v25 }
 0x23b   : > { %1769 = vmatprep.subr.bf16.mxu0 (!%p1557_p10), %v1912_v36 }
 0x23e   : > { %1771 = vmatpush3.bf16.msra.mxu0 (!%p1557_p10), %v1770_v29 }
 0x23f   : > { %1772 = vmatprep.subr.bf16.mxu0 (!%p1557_p10), %v1912_v36 }
 0x242   : > { %1774 = vmatpush3.bf16.msra.mxu0 (!%p1557_p10), %v1773_v5 }
 0x243   : > { %1775 = vmatprep.subr.bf16.mxu0 (!%p1557_p10), %v1912_v36 }
 0x246   : > { %1777 = vmatpush3.bf16.msra.mxu0 (!%p1557_p10), %v1776_v32 }
 0x247   : > { %1778 = vmatprep.subr.bf16.mxu0 (!%p1557_p10), %v1912_v36 }
 0x24a   : > { %1780 = vmatpush3.bf16.msra.mxu0 (!%p1557_p10), %v1779_v37 }
 0x24b   : > { %1781 = vmatprep.subr.bf16.mxu0 (!%p1557_p10), %v1912_v36 }
 0x24e   : > { %1783 = vmatpush3.bf16.msra.mxu0 (!%p1557_p10), %v1782_v58 }
 0x24f   : > { %1784 = vmatprep.subr.bf16.mxu0 (!%p1557_p10), %v1912_v36 }
 0x252   : > { %1786 = vmatpush3.bf16.msra.mxu0 (!%p1557_p10), %v1785_v47 }
 0x307   : > { %v1621_v45 = vpop.f32.mrb[32].mxu0  ;;  %1304 = sbr.rel (%p1557_p10) target bundleno = 1384 (0x568), region = 101 }
 0x308   : > { %v1622_v40 = vpop.f32.mrb[33].mxu0 }
 0x309   : > { %v1623_v41 = vadd.f32 %v1622_v40, %v1621_v45  ;;  %v1624_v49 = vpop.f32.mrb[34].mxu0 }
 0x30a   : > { %v1625_v53 = vpop.f32.mrb[35].mxu0 }
 0x30b   : > { %v1299_v11 = vadd.f32 %v1623_v41, %v1216_v46 }
 0x30d   : > { %1300 = vst [vmem:[#allocation2] sm:$0x3] %v1299_v11 }
 0x314   : > { %v1305_v9 = vld [vmem:[#allocation2] sm:$0x3] }
 0x315   : > { %v1306_v35 = vmul.f32 0.00390625, %v1305_v9 }
 0x317   : > { %1858 = vlog2.f32 %v1306_v35 }
 0x321   : > { %v1859_v10 = vpop.eup %1858 }
 0x322   : > { %v1308_v13 = vmul.f32 0.6931472, %v1859_v10 }
 0x324   : > { %v1309_v21 = vmul.f32 0.33333334, %v1308_v13 }
 0x326   : > { %v1310_v12 = vmul.f32 1.442695, %v1309_v21 }
 0x328   : > { %1860 = vpow2.f32 %v1310_v12 }
 0x332   : > { %v1861_v14 = vpop.eup %1860 }
 0x333   : > { %v1312_v17 = vmul.f32 %v1861_v14, %v1861_v14 }
 0x335   : > { %v1314_v18 = vsel %vm1313_vm1, %v1312_v17, 0.0 }
 0x336   : > { %1315 = vadd.xlane.f32.xlu0 %v1314_v18 }
 0x3c3   : > { %v1316_v48 = vpop.xlane.xlu0 %1315 }
 0x3c4   : > { %1862 = vrsqrt.f32 %v1316_v48  ;;  %vm1319_vm3 = vcmp.eq.f32.partialorder %v1316_v48, inf  ;;  %v1322_v52 = vand.u32 2147483648, %v1316_v48  ;;  %vm1321_vm4 = vcmp.eq.f32.partialorder %v1316_v48, 0.0 }
 0x3ce   : > { %v1863_v50 = vpop.eup %1862 }
 0x3cf   : > { %v1318_v51 = vmul.f32 %v1863_v50, %v1316_v48 }
 0x3d1   : > { %v1320_v54 = vsel %vm1319_vm3, %v1316_v48, %v1318_v51 }
 0x3d2   : > { %v1323_v55 = vsel %vm1321_vm4, %v1322_v52, %v1320_v54 }
 0x3d3   : > { %v1324_v19 = vadd.f32 1e-06, %v1323_v55 }
 0x3d5   : > { %1864 = vrcp.f32 %v1324_v19 }
 0x3df   : > { %v1865_v20 = vpop.eup %1864 }
 0x3e0   : > { %v1326_v27 = vmul.f32 %v1865_v20, %v1861_v14 }
 0x3e2   : > { %1761 = vmatmul.mubr.f32.vlgmr.msra.gmra.mrb[0].mxu0 %v1326_v27 }
 0x4b5   : > { %v1416_v59 = vpop.f32.mrb[0].mxu0 }
 0x4b6   : > { %v1417_v60 = vadd.f32 %v1558_v56, %v1416_v59  ;;  %v1762_v63 = vpop.f32.mrb[1].mxu0 }
 0x4b8   : > { %v1420_v0 = vmul.f32 %v1417_v60, %v1417_v60 }
 0x4ba   : > { %v1421_v2 = vsel %vm1313_vm1, %v1420_v0, 0.0 }
 0x4bb   : > { %1422 = vadd.xlane.f32.xlu0 %v1421_v2 }
 0x548   : > { %v1423_v3 = vpop.xlane.xlu0 %1422 }
 0x549   : > { %1866 = vrsqrt.f32 %v1423_v3  ;;  %vm1426_vm5 = vcmp.eq.f32.partialorder %v1423_v3, inf  ;;  %v1429_v16 = vand.u32 2147483648, %v1423_v3  ;;  %vm1428_vm6 = vcmp.eq.f32.partialorder %v1423_v3, 0.0 }
 0x553   : > { %v1867_v7 = vpop.eup %1866 }
 0x554   : > { %v1425_v15 = vmul.f32 %v1867_v7, %v1423_v3 }
 0x556   : > { %v1427_v23 = vsel %vm1426_vm5, %v1423_v3, %v1425_v15 }
 0x557   : > { %v1430_v38 = vsel %vm1428_vm6, %v1429_v16, %v1427_v23 }
 0x558   : > { %v1431_v8 = vadd.f32 1e-06, %v1430_v38 }
 0x55a   : > { %1868 = vrcp.f32 %v1431_v8 }
 0x564   : > { %v1869_v45 = vpop.eup %1868 }
 0x565   : > { %v1433_v46 = vmul.f32 %v1869_v45, %v1417_v60 }
 0x567   : > { %1434 = vst [vmem:[%s2330_s8] sm:$0x3] %v1433_v46 }
 0x568 PF: > { %s18_s9 = sadd.s32 1, %s1908_s9   ;;  %s2331_s27 = smov %s1896_s28 }
 0x569   : > { %p15_p11 = scmp.ge.s32.totalorder %s18_s9, 4   ;;  %s2332_s28 = smov %s1995_s13 }
 0x56a   : > { %s2333_s29 = smov %s1904_s30  ;;  %s2334_s30 = smov %s2336_s10 }
 0x56b   :  { %17 = sbr.rel (!%p15_p11) target bundleno = 3 (0x3), region = 136 }

</bundles_post_ra>
